<compile_context>
chip_gen: v6e
topology: v6e:2x2x1
jax: 0.10.0
libtpu: 0.0.40
codegen_flags: <defaults>
</compile_context>

<pallas_src>
import math

import jax
import jax.numpy as jnp
from jax.experimental import pallas as pl
from jax.experimental.pallas import tpu as pltpu


def _round_up(x, m):
    return (x + m - 1) // m * m


def _vmem_capacity_bytes():
    """Physical VMEM per TensorCore; conservative fallback if query fails."""
    try:
        info = pltpu.get_tpu_info()
        cap = getattr(info, "vmem_capacity_bytes", None)
        if cap:
            return int(cap)
    except Exception:
        pass
    return 64 << 20  # v7x per-TC VMEM (smallest current generation)


# ----------------------------------------------------------------------------
# Pallas kernel: fused  softplus( (x @ W1) @ W2 + b_eff )
# ----------------------------------------------------------------------------
def _delta_kernel(x_ref, w1_ref, w2_ref, b_ref, o_ref):
    # x_ref : (TM, D)   row tile of flattened input, stored dtype (cast below)
    # w1_ref: (D,  Rp)  linear.weight^T  (zero padded in R, resident in VMEM)
    # w2_ref: (Rp, D)   project.weight^T (zero padded in R, resident in VMEM)
    # b_ref : (1,  D)   folded bias  b1 @ W2 + b2   (f32)
    # o_ref : (TM, D)   softplus output (out_dtype)
    x = x_ref[...].astype(w1_ref.dtype)                       # in-kernel cast
    h = jnp.dot(x, w1_ref[...], preferred_element_type=jnp.float32)   # f32
    # keep h in f32 for the second matmul (dt precision); still HBM-bound.
    z = jnp.dot(h, w2_ref[...].astype(jnp.float32),
                preferred_element_type=jnp.float32) + b_ref[...]
    # torch.nn.Softplus (beta=1, threshold=20) semantics, computed in f32.
    sp = jnp.where(z > 20.0, z, jnp.log1p(jnp.exp(jnp.minimum(z, 20.0))))
    o_ref[...] = sp.astype(o_ref.dtype)


# ----------------------------------------------------------------------------
# One-time parameter preparation (pad/transpose weights, fold first bias)
# ----------------------------------------------------------------------------
def prepare_delta_params(w1, b1, w2, b2, *, weight_dtype=jnp.float32):
    """Call ONCE per parameter set; reuse the result for every forward call.

    w1: (D, R)  = linear.weight^T     b1: (R,)
    w2: (R, D)  = project.weight^T    b2: (D,)
    Returns (w1p, w2p, bp) with R zero-padded to a lane-dense multiple of 128.
    """
    D, R = w1.shape
    Rp = _round_up(R, 128)
    # fold first bias into the second (valid: softplus only after 2nd linear);
    # folding is done in f32 with the ORIGINAL weights.
    b_eff = (b1.astype(jnp.float32) @ w2.astype(jnp.float32)
             + b2.astype(jnp.float32))
    w1p = jnp.zeros((D, Rp), weight_dtype).at[:, :R].set(w1.astype(weight_dtype))
    w2p = jnp.zeros((Rp, D), weight_dtype).at[:R, :].set(w2.astype(weight_dtype))
    bp = b_eff.reshape(1, D).astype(jnp.float32)
    return w1p, w2p, bp


# ----------------------------------------------------------------------------
# Row-tile / pipelining selection (generation aware)
# ----------------------------------------------------------------------------
def _choose_row_tile(N, D, Rp, x_item, o_item, w_bytes, vmem_cap):
    tile_budget = vmem_cap // 4                 # pipelined-tile budget
    avail = tile_budget - 2 * w_bytes           # resident weights (worst-case 2 bufs)
    per_row = 3 * D * x_item + 2 * D * o_item + 4 * (Rp + D)  # x(<=3) + out(2) + f32 temps
    max_rows = max(8, avail // per_row) if avail > 0 else 8
    cap = 1024 if vmem_cap >= (96 << 20) else 512   # v5e/v6e (128 MiB) vs v7x (64 MiB)
    row_tile = max(8, min(cap, (max_rows // 8) * 8))
    if row_tile >= N:
        # one block covering every row; block dim == full array dim is always
        # legal, so no row padding and no masked tail at all.
        return N
    # split rows evenly across grid steps so the tail tile wastes < 8 rows
    n_steps = -(-N // row_tile)
    return _round_up(-(-N // n_steps), 8)


def _x_block_spec(row_tile, D, n_buffers):
    if n_buffers > 2:
        try:
            return pl.BlockSpec((row_tile, D), lambda i: (i, 0),
                                pipeline_mode=pl.Buffered(n_buffers))
        except Exception:  # pipeline_mode / pl.Buffered unavailable: default 2-deep
            pass
    return pl.BlockSpec((row_tile, D), lambda i: (i, 0))


# ----------------------------------------------------------------------------
# Forward
# ----------------------------------------------------------------------------
def delta_network_forward(x, w1p, w2p, bp, *, out_dtype=None):
    """x: (B, L, D); (w1p, w2p, bp) from prepare_delta_params.

    Returns softplus(project(linear(x))) as (B, L, D) in out_dtype
    (defaults to x.dtype).
    """
    B, L, D = x.shape
    N = B * L
    Rp = w1p.shape[1]
    out_dtype = x.dtype if out_dtype is None else out_dtype

    x_item = jnp.dtype(x.dtype).itemsize
    o_item = jnp.dtype(out_dtype).itemsize
    w_bytes = (w1p.size * jnp.dtype(w1p.dtype).itemsize
               + w2p.size * jnp.dtype(w2p.dtype).itemsize
               + bp.size * 4)

    vmem_cap = _vmem_capacity_bytes()
    row_tile = _choose_row_tile(N, D, Rp, x_item, o_item, w_bytes, vmem_cap)
    n_steps = -(-N // row_tile)
    n_x_buf = 3 if n_steps >= 4 else 2          # deepen x pipelining on long grids

    need = (n_x_buf * row_tile * D * x_item     # x buffers
            + 2 * row_tile * D * o_item         # out double buffer
            + 2 * w_bytes                       # resident weights + folded bias
            + row_tile * (Rp + D) * 4)          # f32 h / z temporaries
    vmem_limit = int(min(max(int(1.5 * need) + (2 << 20), 16 << 20),
                         (vmem_cap * 3) // 4))

    cost = pl.CostEstimate(
        flops=4 * N * D * Rp,
        transcendentals=2 * N * D,
        bytes_accessed=N * D * (x_item + o_item) + w_bytes,
    )

    x2d = x.reshape(N, D)   # free: no copy, no pad, no dtype cast in the wrapper

    out = pl.pallas_call(
        _delta_kernel,
        out_shape=jax.ShapeDtypeStruct((N, D), out_dtype),
        grid_spec=pltpu.PrefetchScalarGridSpec(
            num_scalar_prefetch=0,
            grid=(n_steps,),
            in_specs=[
                _x_block_spec(row_tile, D, n_x_buf),          # x row tile
                pl.BlockSpec(w1p.shape, lambda i: (0, 0)),    # W1 (resident)
                pl.BlockSpec(w2p.shape, lambda i: (0, 0)),    # W2 (resident)
                pl.BlockSpec(bp.shape, lambda i: (0, 0)),     # folded bias
            ],
            out_specs=pl.BlockSpec((row_tile, D), lambda i: (i, 0)),
        ),
        compiler_params=pltpu.CompilerParams(
            # TODO(synk): on v7x, try pltpu.CORE_PARALLEL here (or a core_map
            # row split) to shard the row axis across the two TensorCores.
            dimension_semantics=("parallel",),
            vmem_limit_bytes=vmem_limit,
        ),
        cost_estimate=cost,
    )(x2d, w1p, w2p, bp)

    return out.reshape(B, L, D)


# ----------------------------------------------------------------------------
# Deterministic parameter initialization (mirrors the PyTorch __init__)
# ----------------------------------------------------------------------------
def init_delta_params(key, model_dim, dt_rank, dt_min, dt_max, dt_scale=1.0):
    k1, k2, k3, k4 = jax.random.split(key, 4)

    # torch.nn.Linear default init: U(-1/sqrt(in), 1/sqrt(in)) for weight & bias
    bound1 = 1.0 / math.sqrt(model_dim)
    w1 = jax.random.uniform(k1, (model_dim, dt_rank), jnp.float32,
                            -bound1, bound1)          # stored as W^T
    b1 = jax.random.uniform(k2, (dt_rank,), jnp.float32, -bound1, bound1)

    # project.weight ~ U(-dt_init_std, dt_init_std)
    dt_init_std = dt_rank ** (-0.5) * dt_scale
    w2 = jax.random.uniform(k3, (dt_rank, model_dim), jnp.float32,
                            -dt_init_std, dt_init_std)  # stored as W^T

    # project.bias = inverse-softplus of dt, dt log-uniform in [dt_min, dt_max]
    u = jax.random.uniform(k4, (model_dim,), jnp.float32)
    dt = jnp.exp(u * (math.log(dt_max) - math.log(dt_min)) + math.log(dt_min))
    dt = jnp.maximum(dt, 1e-4)
    b2 = dt + jnp.log(-jnp.expm1(-dt))                  # inverse softplus
    return w1, b1, w2, b2


# ----------------------------------------------------------------------------
# Pure-JAX reference for correctness checking
# ----------------------------------------------------------------------------
def delta_network_ref(x, w1, b1, w2, b2):
    h = x @ w1 + b1
    z = h @ w2 + b2
    return jnp.where(z > 20.0, z, jnp.log1p(jnp.exp(jnp.minimum(z, 20.0))))


if __name__ == "__main__":
    key = jax.random.PRNGKey(0)
    kx1, kp1, kx2, kp2 = jax.random.split(key, 4)
    dt_min, dt_max = 1e-3, 1e-1

    # --- case 1: lane-aligned model_dim (fast path, zero wrapper copies) ---
    B, L, D, R = 2, 8, 128, 8
    x = jax.random.normal(kx1, (B, L, D), jnp.float32)
    w1, b1, w2, b2 = init_delta_params(kp1, D, R, dt_min, dt_max)
    y_ref = delta_network_ref(x, w1, b1, w2, b2)

    # f32 weights, f32 output
    params_f32 = prepare_delta_params(w1, b1, w2, b2, weight_dtype=jnp.float32)
    y = jax.block_until_ready(delta_network_forward(x, *params_f32))
    assert y.shape == (B, L, D)
    assert jnp.allclose(y, y_ref, atol=1e-4, rtol=1e-4), "f32 mismatch vs reference"

    # bf16 weights + bf16 output (x cast in-kernel, h kept in f32)
    params_bf16 = prepare_delta_params(w1, b1, w2, b2, weight_dtype=jnp.bfloat16)
    y_bf = jax.block_until_ready(
        delta_network_forward(x, *params_bf16, out_dtype=jnp.bfloat16))
    assert y_bf.dtype == jnp.bfloat16
    assert jnp.allclose(y_bf.astype(jnp.float32), y_ref,
                        atol=2e-2, rtol=2e-1), "bf16 mismatch vs reference"

    # --- case 2: ragged shapes (D % 128 != 0, rows % 8 != 0) ---
    B2, L2, D2, R2 = 2, 7, 32, 4
    x2 = jax.random.normal(kx2, (B2, L2, D2), jnp.float32)
    w1b, b1b, w2b, b2b = init_delta_params(kp2, D2, R2, dt_min, dt_max)
    y2_ref = delta_network_ref(x2, w1b, b1b, w2b, b2b)
    params2 = prepare_delta_params(w1b, b1b, w2b, b2b)
    y2 = jax.block_until_ready(delta_network_forward(x2, *params2))
    assert y2.shape == (B2, L2, D2)
    assert jnp.allclose(y2, y2_ref, atol=1e-4, rtol=1e-4), "ragged mismatch vs reference"

    print("KERNEL_OK")
</pallas_src>

<mosaic_0001>
module attributes {stable_mosaic.version = 11 : i64} {
  func.func @_delta_kernel(%arg0: i32, %arg1: memref<16x128xf32, #tpu.memory_space<vmem>>, %arg2: memref<128x128xf32, #tpu.memory_space<vmem>>, %arg3: memref<128x128xf32, #tpu.memory_space<vmem>>, %arg4: memref<1x128xf32, #tpu.memory_space<vmem>>, %arg5: memref<16x128xf32, #tpu.memory_space<vmem>>) attributes {dimension_semantics = [#tpu.dimension_semantics<parallel>], iteration_bounds = array<i64: 1>, scalar_prefetch = 0 : i64, scratch_operands = 0 : i64, tpu.core_type = #tpu.core_type<tc>, window_params = [{transform_indices = @transform_0, window_bounds = array<i64: 16, 128>}, {pipeline_mode = #tpu.pipeline_mode<synchronous>, transform_indices = @transform_1, window_bounds = array<i64: 128, 128>}, {pipeline_mode = #tpu.pipeline_mode<synchronous>, transform_indices = @transform_2, window_bounds = array<i64: 128, 128>}, {pipeline_mode = #tpu.pipeline_mode<synchronous>, transform_indices = @transform_3, window_bounds = array<i64: 1, 128>}, {transform_indices = @transform_4, window_bounds = array<i64: 16, 128>}]} {
    %c0 = arith.constant 0 : index
    %c0_0 = arith.constant 0 : index
    %0 = vector.load %arg1[%c0, %c0_0] : memref<16x128xf32, #tpu.memory_space<vmem>>, vector<16x128xf32>
    %c0_1 = arith.constant 0 : index
    %c0_2 = arith.constant 0 : index
    %1 = vector.load %arg2[%c0_1, %c0_2] : memref<128x128xf32, #tpu.memory_space<vmem>>, vector<128x128xf32>
    %cst = arith.constant dense<0.000000e+00> : vector<16x128xf32>
    %2 = tpu.matmul %0, %1, %cst {dimension_numbers = #tpu.dot_dimension_numbers<[1], [0], [0], [1], [0, 0, 1, 1], [], []>} : vector<16x128xf32>, vector<128x128xf32>, vector<16x128xf32> -> vector<16x128xf32>
    %c0_3 = arith.constant 0 : index
    %c0_4 = arith.constant 0 : index
    %3 = vector.load %arg3[%c0_3, %c0_4] : memref<128x128xf32, #tpu.memory_space<vmem>>, vector<128x128xf32>
    %cst_5 = arith.constant dense<0.000000e+00> : vector<16x128xf32>
    %4 = tpu.matmul %2, %3, %cst_5 {dimension_numbers = #tpu.dot_dimension_numbers<[1], [0], [0], [1], [0, 0, 1, 1], [], []>} : vector<16x128xf32>, vector<128x128xf32>, vector<16x128xf32> -> vector<16x128xf32>
    %c0_6 = arith.constant 0 : index
    %c0_7 = arith.constant 0 : index
    %5 = vector.load %arg4[%c0_6, %c0_7] : memref<1x128xf32, #tpu.memory_space<vmem>>, vector<1x128xf32>
    %6 = vector.broadcast %5 : vector<1x128xf32> to vector<16x128xf32>
    %7 = arith.addf %4, %6 : vector<16x128xf32>
    %cst_8 = arith.constant 2.000000e+01 : f32
    %8 = vector.broadcast %cst_8 : f32 to vector<16x128xf32>
    %9 = arith.cmpf ogt, %7, %8 : vector<16x128xf32>
    %cst_9 = arith.constant 2.000000e+01 : f32
    %10 = vector.broadcast %cst_9 : f32 to vector<16x128xf32>
    %11 = arith.minimumf %7, %10 : vector<16x128xf32>
    %12 = math.exp %11 : vector<16x128xf32>
    %13 = math.log1p %12 : vector<16x128xf32>
    %14 = arith.select %9, %7, %13 : vector<16x128xi1>, vector<16x128xf32>
    %c0_10 = arith.constant 0 : index
    %c0_11 = arith.constant 0 : index
    %15 = vector.load %arg5[%c0_10, %c0_11] : memref<16x128xf32, #tpu.memory_space<vmem>>, vector<16x128xf32>
    tpu.vector_store %arg5[%c0_10, %c0_11], %14 {strides = array<i32>} : memref<16x128xf32, #tpu.memory_space<vmem>>, vector<16x128xf32>,
    return
  }
  func.func @transform_0(%arg0: i32) -> (i32, i32) {
    %c0_i32 = arith.constant 0 : i32
    %c0_i32_0 = arith.constant 0 : i32
    return %arg0, %c0_i32 : i32, i32
  }
  func.func @transform_1(%arg0: i32) -> (i32, i32) {
    %c0_i32 = arith.constant 0 : i32
    %c0_i32_0 = arith.constant 0 : i32
    %c0_i32_1 = arith.constant 0 : i32
    return %c0_i32, %c0_i32_0 : i32, i32
  }
  func.func @transform_2(%arg0: i32) -> (i32, i32) {
    %c0_i32 = arith.constant 0 : i32
    %c0_i32_0 = arith.constant 0 : i32
    %c0_i32_1 = arith.constant 0 : i32
    return %c0_i32, %c0_i32_0 : i32, i32
  }
  func.func @transform_3(%arg0: i32) -> (i32, i32) {
    %c0_i32 = arith.constant 0 : i32
    %c0_i32_0 = arith.constant 0 : i32
    %c0_i32_1 = arith.constant 0 : i32
    return %c0_i32, %c0_i32_0 : i32, i32
  }
  func.func @transform_4(%arg0: i32) -> (i32, i32) {
    %c0_i32 = arith.constant 0 : i32
    %c0_i32_0 = arith.constant 0 : i32
    return %arg0, %c0_i32 : i32, i32
  }
}

</mosaic_0001>

<bundles_post_ra>
// kernel: tpu_custom_call.1
= control target key start
LH: loop header
LB: loop body
LE: loop exit
PB: predicated region body
PF: predicated region fallthrough
CT: control target
= control target key end

     0   :  { %9 = vsyncpa [#allocation3], 0  ;;  %s563_s0 = inlined_call_operand.hbm [shape: f32[16,128], index: 0, kind: input, shape index: {}]   ;;  %s564_s1 = inlined_call_operand.hbm [shape: f32[128,128], index: 1, kind: input, shape index: {}]   ;;  %s565_s2 = inlined_call_operand.hbm [shape: f32[128,128], index: 2, kind: input, shape index: {}]   ;;  %s566_s3 = inlined_call_operand.vmem [shape: f32[1,128], index: 3, kind: input, shape index: {}]   ;;  %s567_s4 = inlined_call_operand.hbm [shape: f32[16,128], index: 4, kind: output, shape index: {}]  }
   0x1   :  { %10 = vsyncpa [#allocation6], 0 }
   0x2   :  { %11 = vsyncpa [#allocation4], 0  ;;  %s505_s15 = smov [#allocation5]   ;;  %s506_s17 = smov [#allocation2]  }
   0x3   :  { %s29_s16 = sshll.u32 %s505_s15, 4  ;;  %s17_s18 = sshll.u32 %s506_s17, 4  ;;  %s30_s16 = int_to_ptr.vmem [resolvable:$true] %s29_s16  ;;  %s18_s18 = int_to_ptr.vmem [resolvable:$true] %s17_s18 }
   0x4   :  { %s427_s19 = scalar_lea.vmem %s30_s16, 2048  ;;  %p432_p1 = scmp.lt.s32.totalorder %s30_s16, %s30_s16 }
   0x5   :  { %p428_p0 = scmp.ne.s32.totalorder %s30_s16, %s427_s19  ;;  %p433_p2 = scmp.lt.s32.totalorder %s427_s19, %s427_s19 }
   0x7   :  { %p434_p3 = por %p433_p2, %p432_p1 }
   0x9   :  { %p435_p4 = pnand %p434_p3, %p428_p0 }
   0xb   :  { %438 = shalt.err (!%p435_p4)
}
   0xc   :  { %s507_s20 = smov 128   ;;  %s508_s21 = smov 8  }
   0xd   :  { %35 = dma.hbm_to_vmem [thread:$0]  %s564_s1, 2048, %s30_s16, [#allocation6], %s507_s20, %s507_s20, %s508_s21  }
   0xe   :  { %s447_s24 = scalar_lea.vmem %s18_s18, 256  ;;  %p452_p6 = scmp.lt.s32.totalorder %s18_s18, %s18_s18 }
   0xf   :  { %p448_p5 = scmp.ne.s32.totalorder %s18_s18, %s447_s24  ;;  %p453_p7 = scmp.lt.s32.totalorder %s447_s24, %s447_s24 }
  0x11   :  { %p454_p8 = por %p453_p7, %p452_p6 }
  0x13   :  { %p455_p9 = pnand %p454_p8, %p448_p5 }
  0x15   :  { %458 = shalt.err (!%p455_p9)
}
  0x16   :  { %23 = dma.hbm_to_vmem [thread:$0]  %s563_s0, 256, %s18_s18, [#allocation3], %s507_s20, %s507_s20, %s508_s21  }
  0x17   :  { %s509_s27 = smov [#allocation7]  }
  0x18   :  { %s41_s28 = sshll.u32 %s509_s27, 4  ;;  %s42_s28 = int_to_ptr.vmem [resolvable:$true] %s41_s28 }
  0x19   :  { %s467_s29 = scalar_lea.vmem %s42_s28, 2048  ;;  %p472_p11 = scmp.lt.s32.totalorder %s42_s28, %s42_s28 }
  0x1a   :  { %p468_p10 = scmp.ne.s32.totalorder %s42_s28, %s467_s29  ;;  %p473_p12 = scmp.lt.s32.totalorder %s467_s29, %s467_s29 }
  0x1c   :  { %p474_p13 = por %p473_p12, %p472_p11 }
  0x1e   :  { %p475_p0 = pnand %p474_p13, %p468_p10 }
  0x20   :  { %478 = shalt.err (!%p475_p0)
}
  0x21   :  { %47 = dma.hbm_to_vmem [thread:$0]  %s565_s2, 2048, %s42_s28, [#allocation6], %s507_s20, %s507_s20, %s508_s21  }
  0x22   :  { %499 = dma.done.wait [#allocation3], 256  }
  0x23   :  { %500 = vsyncadd [#allocation3], 4294967040 }
  0x24   :  { %501 = dma.done.wait [#allocation6], 4096  }
  0x25   :  { %502 = vsyncadd [#allocation6], 4294963200  ;;  %v76_v0 = vld [vmem:[#allocation5 + $0x78] sm:$0xff]  ;;  %v75_v1 = vld [vmem:[#allocation5 + $0x70] sm:$0xff] }
  0x26   :  { %335 = vmatprep.subr.mxu0 %v76_v0  ;;  %v74_v2 = vld [vmem:[#allocation5 + $0x68] sm:$0xff]  ;;  %v73_v3 = vld [vmem:[#allocation5 + $0x60] sm:$0xff]  ;;  %v59_v4 = vld [vmem:[#allocation2] sm:$0xff] }
  0x27   :  { %336 = vmatpush3.msra.mxu0 %v76_v0  ;;  %v72_v5 = vld [vmem:[#allocation5 + $0x58] sm:$0xff]  ;;  %367 = vmatprep.mubr.f32.mxu0 %v59_v4  ;;  %v166_v7 = vld [vmem:[#allocation7 + $0x70] sm:$0xff]  ;;  %v165_v9 = vld [vmem:[#allocation7 + $0x68] sm:$0xff] }
  0x28   :  { %337 = vmatprep.subr.mxu0 %v75_v1  ;;  %v167_v6 = vld [vmem:[#allocation7 + $0x78] sm:$0xff]  ;;  %v71_v8 = vld [vmem:[#allocation5 + $0x50] sm:$0xff]  ;;  %v70_v10 = vld [vmem:[#allocation5 + $0x48] sm:$0xff] }
  0x29   :  { %338 = vmatpush3.msra.mxu0 %v75_v1  ;;  %370 = vmatprep.subr.mxu1 %v167_v6  ;;  %v164_v11 = vld [vmem:[#allocation7 + $0x60] sm:$0xff]  ;;  %v163_v13 = vld [vmem:[#allocation7 + $0x58] sm:$0xff]  ;;  %v162_v15 = vld [vmem:[#allocation7 + $0x50] sm:$0xff] }
  0x2a   :  { %339 = vmatprep.subr.mxu0 %v74_v2  ;;  %371 = vmatpush3.msra.mxu1 %v167_v6  ;;  %v69_v12 = vld [vmem:[#allocation5 + $0x40] sm:$0xff]  ;;  %v68_v14 = vld [vmem:[#allocation5 + $0x38] sm:$0xff]  ;;  %v67_v16 = vld [vmem:[#allocation5 + $0x30] sm:$0xff] }
  0x2b   :  { %340 = vmatpush3.msra.mxu0 %v74_v2  ;;  %372 = vmatprep.subr.mxu1 %v166_v7  ;;  %v161_v17 = vld [vmem:[#allocation7 + $0x48] sm:$0xff]  ;;  %v160_v19 = vld [vmem:[#allocation7 + $0x40] sm:$0xff]  ;;  %v159_v21 = vld [vmem:[#allocation7 + $0x38] sm:$0xff] }
  0x2c   :  { %341 = vmatprep.subr.mxu0 %v73_v3  ;;  %373 = vmatpush3.msra.mxu1 %v166_v7  ;;  %v66_v18 = vld [vmem:[#allocation5 + $0x28] sm:$0xff]  ;;  %v65_v20 = vld [vmem:[#allocation5 + $0x20] sm:$0xff]  ;;  %v64_v22 = vld [vmem:[#allocation5 + $0x18] sm:$0xff] }
  0x2d   :  { %342 = vmatpush3.msra.mxu0 %v73_v3  ;;  %374 = vmatprep.subr.mxu1 %v165_v9  ;;  %v158_v23 = vld [vmem:[#allocation7 + $0x30] sm:$0xff]  ;;  %v157_v25 = vld [vmem:[#allocation7 + $0x28] sm:$0xff]  ;;  %v156_v27 = vld [vmem:[#allocation7 + $0x20] sm:$0xff] }
  0x2e   :  { %343 = vmatprep.subr.mxu0 %v72_v5  ;;  %375 = vmatpush3.msra.mxu1 %v165_v9  ;;  %v63_v24 = vld [vmem:[#allocation5 + $0x10] sm:$0xff]  ;;  %v62_v26 = vld [vmem:[#allocation5 + $0x8] sm:$0xff]  ;;  %v61_v28 = vld [vmem:[#allocation5] sm:$0xff] }
  0x2f   :  { %344 = vmatpush3.msra.mxu0 %v72_v5  ;;  %376 = vmatprep.subr.mxu1 %v164_v11  ;;  %v155_v29 = vld [vmem:[#allocation7 + $0x18] sm:$0xff]  ;;  %v154_v31 = vld [vmem:[#allocation7 + $0x10] sm:$0xff]  ;;  %v153_v32 = vld [vmem:[#allocation7 + $0x8] sm:$0xff] }
  0x30   :  { %345 = vmatprep.subr.mxu0 %v71_v8  ;;  %377 = vmatpush3.msra.mxu1 %v164_v11  ;;  %v60_v30 = vld [vmem:[#allocation2 + $0x8] sm:$0xff]  ;;  %v152_v33 = vld [vmem:[#allocation7] sm:$0xff]  ;;  %v298_v36 = vld [vmem:[%s566_s3] ss:$0 sm:$0xff]  ;;  %s510_s3 = smov [#allocation8]  }
  0x31   :  { %346 = vmatpush3.msra.mxu0 %v71_v8  ;;  %378 = vmatprep.subr.mxu1 %v163_v13  ;;  %s285_s5 = sshll.u32 %s510_s3, 4  ;;  %s286_s5 = int_to_ptr.vmem [resolvable:$true] %s285_s5 }
  0x32   :  { %347 = vmatprep.subr.mxu0 %v70_v10  ;;  %379 = vmatpush3.msra.mxu1 %v163_v13  ;;  %s479_s6 = scalar_lea.vmem %s286_s5, 256  ;;  %p484_p2 = scmp.lt.s32.totalorder %s286_s5, %s286_s5 }
  0x33   :  { %348 = vmatpush3.msra.mxu0 %v70_v10  ;;  %380 = vmatprep.subr.mxu1 %v162_v15  ;;  %p480_p1 = scmp.ne.s32.totalorder %s286_s5, %s479_s6  ;;  %p485_p3 = scmp.lt.s32.totalorder %s479_s6, %s479_s6 }
  0x34   :  { %349 = vmatprep.subr.mxu0 %v69_v12  ;;  %381 = vmatpush3.msra.mxu1 %v162_v15 }
  0x35   :  { %350 = vmatpush3.msra.mxu0 %v69_v12  ;;  %382 = vmatprep.subr.mxu1 %v161_v17  ;;  %p486_p4 = por %p485_p3, %p484_p2 }
  0x36   :  { %351 = vmatprep.subr.mxu0 %v68_v14  ;;  %383 = vmatpush3.msra.mxu1 %v161_v17 }
  0x37   :  { %352 = vmatpush3.msra.mxu0 %v68_v14  ;;  %384 = vmatprep.subr.mxu1 %v160_v19  ;;  %p487_p5 = pnand %p486_p4, %p480_p1 }
  0x38   :  { %353 = vmatprep.subr.mxu0 %v67_v16  ;;  %385 = vmatpush3.msra.mxu1 %v160_v19 }
  0x39   :  { %354 = vmatpush3.msra.mxu0 %v67_v16  ;;  %386 = vmatprep.subr.mxu1 %v159_v21 }
  0x3a   :  { %355 = vmatprep.subr.mxu0 %v66_v18  ;;  %387 = vmatpush3.msra.mxu1 %v159_v21 }
  0x3b   :  { %356 = vmatpush3.msra.mxu0 %v66_v18  ;;  %388 = vmatprep.subr.mxu1 %v158_v23 }
  0x3c   :  { %357 = vmatprep.subr.mxu0 %v65_v20  ;;  %389 = vmatpush3.msra.mxu1 %v158_v23 }
  0x3d   :  { %358 = vmatpush3.msra.mxu0 %v65_v20  ;;  %390 = vmatprep.subr.mxu1 %v157_v25 }
  0x3e   :  { %359 = vmatprep.subr.mxu0 %v64_v22  ;;  %391 = vmatpush3.msra.mxu1 %v157_v25 }
  0x3f   :  { %360 = vmatpush3.msra.mxu0 %v64_v22  ;;  %392 = vmatprep.subr.mxu1 %v156_v27 }
  0x40   :  { %361 = vmatprep.subr.mxu0 %v63_v24  ;;  %393 = vmatpush3.msra.mxu1 %v156_v27 }
  0x41   :  { %362 = vmatpush3.msra.mxu0 %v63_v24  ;;  %394 = vmatprep.subr.mxu1 %v155_v29 }
  0x42   :  { %363 = vmatprep.subr.mxu0 %v62_v26  ;;  %395 = vmatpush3.msra.mxu1 %v155_v29 }
  0x43   :  { %364 = vmatpush3.msra.mxu0 %v62_v26  ;;  %396 = vmatprep.subr.mxu1 %v154_v31 }
  0x44   :  { %365 = vmatprep.subr.mxu0 %v61_v28  ;;  %397 = vmatpush3.msra.mxu1 %v154_v31 }
  0x45   :  { %366 = vmatpush3.msra.mxu0 %v61_v28  ;;  %398 = vmatprep.subr.mxu1 %v153_v32 }
  0x46   :  { %368 = vmatmul.mubr.f32.vlgmr.msra.gmra.mxu0 %v60_v30  ;;  %399 = vmatpush3.msra.mxu1 %v153_v32 }
  0x47   :  { %400 = vmatprep.subr.mxu1 %v152_v33 }
  0x48   :  { %401 = vmatpush3.msra.mxu1 %v152_v33 }
 0x106   :  { %v369_v34 = vpop.f32.mrf.mxu0 }
 0x108   :  { %v143_v35 = vpop.f32.mrf.mxu0 }
 0x109   :  { %402 = vmatprep.mubr.f32.mxu1 %v143_v35 }
 0x10a   :  { %403 = vmatmul.mubr.f32.vlgmr.msra.gmra.mxu1 %v369_v34 }
 0x1ca   :  { %v404_v37 = vpop.f32.mrf.mxu1 }
 0x1cb   :  { %v247_v38 = vadd.f32 %v404_v37, %v298_v36 }
 0x1cc   :  { %v241_v39 = vpop.f32.mrf.mxu1 }
 0x1cd   :  { %v253_v40 = vmin.f32 %v247_v38, 20.0  ;;  %v242_v41 = vadd.f32 %v298_v36, %v241_v39  ;;  %vm251_vm1 = vcmp.gt.f32.partialorder %v247_v38, 20.0 }
 0x1cf   :  { %v256_v42 = vmul.f32 1.442695, %v253_v40  ;;  %v252_v43 = vmin.f32 %v242_v41, 20.0  ;;  %vm250_vm3 = vcmp.gt.f32.partialorder %v242_v41, 20.0 }
 0x1d1   :  { %411 = vpow2.f32 %v256_v42  ;;  %v254_v44 = vmul.f32 1.442695, %v252_v43 }
 0x1d3   :  { %413 = vpow2.f32 %v254_v44 }
 0x1de   :  { %v412_v45 = vpop.eup %411 }
 0x1df   :  { %v267_v46 = vadd.f32 1.0, %v412_v45  ;;  %v270_v49 = vmul.f32 -0.5, %v412_v45  ;;  %v273_v52 = vand.u32 2147483647, %v412_v45 }
 0x1e0   :  { %v414_v47 = vpop.eup %413 }
 0x1e1   :  { %v258_v48 = vadd.f32 1.0, %v414_v47  ;;  %415 = vlog2.f32 %v267_v46  ;;  %v261_v50 = vmul.f32 -0.5, %v414_v47  ;;  %v271_v51 = vadd.f32 1.0, %v270_v49 }
 0x1e2   :  { %v264_v55 = vand.u32 2147483647, %v414_v47  ;;  %vm274_vm0 = vcmp.lt.f32.partialorder %v273_v52, 0.0004427343 }
 0x1e3   :  { %417 = vlog2.f32 %v258_v48  ;;  %v262_v53 = vadd.f32 1.0, %v261_v50  ;;  %v272_v57 = vmul.f32 %v412_v45, %v271_v51 }
 0x1e4   :  { %vm265_vm2 = vcmp.lt.f32.partialorder %v264_v55, 0.0004427343 }
 0x1e5   :  { %v263_v60 = vmul.f32 %v414_v47, %v262_v53 }
 0x1ee   :  { %v416_v54 = vpop.eup %415 }
 0x1ef   :  { %v269_v56 = vmul.f32 0.6931472, %v416_v54 }
 0x1f0   :  { %v418_v58 = vpop.eup %417 }
 0x1f1   :  { %v260_v59 = vmul.f32 0.6931472, %v418_v58  ;;  %v275_v61 = vsel %vm274_vm0, %v272_v57, %v269_v56 }
 0x1f2   :  { %v277_v62 = vsel %vm251_vm1, %v247_v38, %v275_v61 }
 0x1f3   :  { %v266_v63 = vsel %vm265_vm2, %v263_v60, %v260_v59  ;;  %279 = vst [vmem:[#allocation8 + $0x8] sm:$0xff] %v277_v62 }
 0x1f4   :  { %v276_v0 = vsel %vm250_vm3, %v242_v41, %v266_v63 }
 0x1f5   :  { %278 = vst [vmem:[#allocation8] sm:$0xff] %v276_v0 }
 0x1f6   :  { %490 = shalt.err (!%p487_p5)
}
 0x1f7   :  { %291 = dma.vmem_to_hbm [thread:$0]  %s286_s5, 256, %s567_s4, [#allocation4], %s507_s20, %s507_s20, %s508_s21  }
 0x1f8   :  { %503 = dma.done.wait [#allocation4], 256  }
 0x1f9   :  { %504 = vsyncadd [#allocation4], 4294967040 }
 0x1fa   :  { %295 = vsyncpa [#allocation3], 1 }
 0x1fb   :  { %296 = vsyncpa [#allocation6], 1 }
 0x1fc   :  { %297 = vsyncpa [#allocation4], 1 }

</bundles_post_ra>
